<compile_context>
chip_gen: v5e
topology: v5e:2x2
jax: 0.10.0
libtpu: 0.0.40
codegen_flags: <defaults>
</compile_context>

<pallas_src>
import jax
import jax.numpy as jnp
from jax.experimental import pallas as pl
from jax.experimental.pallas import tpu as pltpu

_LANE = 128  # TPU lane width (last dim); also the batch-tile granularity used here.


def _round_up(n, m):
    return ((n + m - 1) // m) * m


def fvsbn_kernel(x_ref, wt_ref, b_ref, mask_ref, o_ref):
    # x_ref:    (TB, Dp)  matmul dtype (batch tile of inputs)
    # wt_ref:   (Dp, Dp)  matmul dtype, ALREADY transposed (W.T), grid-resident
    # b_ref:    (1,  Dp)  f32 bias row, grid-resident
    # mask_ref: (Dp, 1)   f32 validity column (1.0 for real feature cols, 0.0 for pad)
    # o_ref:    (TB, 1)   f32 per-row log-likelihood sums
    z = jnp.dot(x_ref[...], wt_ref[...],
                preferred_element_type=jnp.float32) + b_ref[...]

    # Elementwise math in f32 regardless of matmul dtype (v5e has no bf16 VPU/EUP).
    x = x_ref[...].astype(jnp.float32)

    # log(sigmoid(z)) on the EUP (numerically-stable form of the reference's
    # log(sigmoid(z)); identical away from saturation).
    lm = jax.nn.log_sigmoid(z)

    # Reference semantics:  x*lm + (1-x)*(1-lm)  ==  (2x-1)*lm + (1-x)   (fewer VPU ops;
    # exact for binary x).
    ll = (2.0 * x - 1.0) * lm + (1.0 - x)

    # Mask padded columns AND reduce over features in one MXU matvec (idle-slot work
    # instead of VPU iota/compare/select + XLU cross-lane reduce).
    o_ref[...] = jnp.dot(ll, mask_ref[...], preferred_element_type=jnp.float32)


def fvsbn_forward(x, w, b, *, block_b=512, matmul_dtype=jnp.bfloat16):
    """FVSBN forward.  x: (B, D), w: (D, D) strictly lower-triangular, b: (D,) -> (B,)."""
    B, D = x.shape
    assert w.shape == (D, D) and b.shape == (D,)

    # Feature dim padded to a lane-dense multiple of 128; batch tile a multiple of 128
    # (feeds the 128/256-wide MXU and keeps bf16 (16,128) sublane packing intact).
    d_pad = _round_up(max(D, _LANE), _LANE)
    block_b = max(_LANE, (block_b // _LANE) * _LANE)
    tb = min(block_b, _round_up(B, _LANE))
    b_pad = _round_up(B, tb)

    # Skip the wrapper-side x copy entirely when no padding / cast is needed
    # (avoids an un-hidden extra HBM read+write of x).
    if B == b_pad and D == d_pad and x.dtype == matmul_dtype:
        x_p = x
    else:
        x_p = jnp.zeros((b_pad, d_pad), matmul_dtype).at[:B, :D].set(
            x.astype(matmul_dtype))

    # Pre-transposed, padded W.T (transpose is free: the pad copy already exists).
    wt_p = jnp.zeros((d_pad, d_pad), matmul_dtype).at[:D, :D].set(
        w.T.astype(matmul_dtype))
    b_p = jnp.zeros((1, d_pad), jnp.float32).at[0, :D].set(b.astype(jnp.float32))
    # Validity mask column: folds padded-column masking + the row reduction into one
    # MXU matvec inside the kernel.
    mask_p = jnp.zeros((d_pad, 1), jnp.float32).at[:D, 0].set(1.0)

    grid = (b_pad // tb,)

    out = pl.pallas_call(
        fvsbn_kernel,
        out_shape=jax.ShapeDtypeStruct((b_pad, 1), jnp.float32),
        grid_spec=pltpu.PrefetchScalarGridSpec(
            num_scalar_prefetch=0,
            grid=grid,
            in_specs=[
                pl.BlockSpec((tb, d_pad), lambda i: (i, 0)),      # x: tiled over batch
                pl.BlockSpec((d_pad, d_pad), lambda i: (0, 0)),   # W.T: resident
                pl.BlockSpec((1, d_pad), lambda i: (0, 0)),       # b: resident
                pl.BlockSpec((d_pad, 1), lambda i: (0, 0)),       # mask col: resident
            ],
            out_specs=pl.BlockSpec((tb, 1), lambda i: (i, 0)),
        ),
        compiler_params=pltpu.CompilerParams(
            # Batch tiles are independent -> shard across TensorCores (v7x megacore).
            dimension_semantics=("parallel",),
            # Raise the default scoped VMEM limit (16 MiB v5e / 32 MiB v6e+v7x) so the
            # W-resident layout keeps working for larger D; stays under v7x's 64 MiB
            # physical VMEM with headroom.
            vmem_limit_bytes=48 * 1024 * 1024,
        ),
    )(x_p, wt_p, b_p, mask_p)

    return out[:B, 0]


def fvsbn_reference(x, w, b):
    z = x @ w.T + b
    means = jax.nn.sigmoid(z)
    lm = jnp.log(means)
    ll = x * lm + (1.0 - x) * (1.0 - lm)
    return jnp.sum(ll, axis=1)


if __name__ == "__main__":
    key = jax.random.PRNGKey(0)
    B, D = 8, 32                     # inp_dimensions = 32

    k_x, k_w, k_b = jax.random.split(key, 3)

    # nn.Linear-style init (uniform +/- 1/sqrt(D)), then zero weights[row, row:]
    # as in FVSBN.__init__ (strictly lower-triangular).
    bound = 1.0 / jnp.sqrt(jnp.float32(D))
    w = jax.random.uniform(k_w, (D, D), jnp.float32, -bound, bound)
    w = w * jnp.tril(jnp.ones((D, D), jnp.float32), k=-1)
    b = jax.random.uniform(k_b, (D,), jnp.float32, -bound, bound)

    # Binary inputs (FVSBN models binary data); kernel is exact for any float input.
    x = (jax.random.uniform(k_x, (B, D), jnp.float32) > 0.5).astype(jnp.float32)

    ref = fvsbn_reference(x, w, b)

    # f32-matmul path: matches the PyTorch module's semantics to tight tolerance.
    out_f32 = jax.block_until_ready(fvsbn_forward(x, w, b, matmul_dtype=jnp.float32))
    assert out_f32.shape == (B,)
    assert jnp.allclose(out_f32, ref, rtol=1e-5, atol=1e-5), (out_f32, ref)

    # Default bf16-matmul path: MXU-native on v5e/v6e/v7x, halves W VMEM/HBM traffic;
    # f32 accumulation + f32 elementwise keep the error to W-rounding only
    # (tolerance scales ~sqrt(D); validated here at D=32).
    out = jax.block_until_ready(fvsbn_forward(x, w, b))
    assert out.shape == (B,)
    assert jnp.allclose(out, ref, rtol=0.0, atol=1e-1), (out, ref)

    print("KERNEL_OK")
</pallas_src>

<mosaic_0001>
module attributes {stable_mosaic.version = 11 : i64} {
  func.func @fvsbn_kernel(%arg0: i32, %arg1: memref<128x128xf32, #tpu.memory_space<vmem>>, %arg2: memref<128x128xf32, #tpu.memory_space<vmem>>, %arg3: memref<1x128xf32, #tpu.memory_space<vmem>>, %arg4: memref<128x1xf32, #tpu.memory_space<vmem>>, %arg5: memref<128x1xf32, #tpu.memory_space<vmem>>) attributes {dimension_semantics = [#tpu.dimension_semantics<parallel>], iteration_bounds = array<i64: 1>, scalar_prefetch = 0 : i64, scratch_operands = 0 : i64, tpu.core_type = #tpu.core_type<tc>, window_params = [{transform_indices = @transform_0, window_bounds = array<i64: 128, 128>}, {pipeline_mode = #tpu.pipeline_mode<synchronous>, transform_indices = @transform_1, window_bounds = array<i64: 128, 128>}, {pipeline_mode = #tpu.pipeline_mode<synchronous>, transform_indices = @transform_2, window_bounds = array<i64: 1, 128>}, {pipeline_mode = #tpu.pipeline_mode<synchronous>, transform_indices = @transform_3, window_bounds = array<i64: 128, 1>}, {transform_indices = @transform_4, window_bounds = array<i64: 128, 1>}]} {
    %c0 = arith.constant 0 : index
    %c0_0 = arith.constant 0 : index
    %0 = vector.load %arg1[%c0, %c0_0] : memref<128x128xf32, #tpu.memory_space<vmem>>, vector<128x128xf32>
    %c0_1 = arith.constant 0 : index
    %c0_2 = arith.constant 0 : index
    %1 = vector.load %arg2[%c0_1, %c0_2] : memref<128x128xf32, #tpu.memory_space<vmem>>, vector<128x128xf32>
    %cst = arith.constant dense<0.000000e+00> : vector<128x128xf32>
    %2 = tpu.matmul %0, %1, %cst {dimension_numbers = #tpu.dot_dimension_numbers<[1], [0], [0], [1], [0, 0, 1, 1], [], []>} : vector<128x128xf32>, vector<128x128xf32>, vector<128x128xf32> -> vector<128x128xf32>
    %c0_3 = arith.constant 0 : index
    %c0_4 = arith.constant 0 : index
    %3 = vector.load %arg3[%c0_3, %c0_4] : memref<1x128xf32, #tpu.memory_space<vmem>>, vector<1x128xf32>
    %4 = vector.broadcast %3 : vector<1x128xf32> to vector<128x128xf32>
    %5 = arith.addf %2, %4 : vector<128x128xf32>
    %c0_5 = arith.constant 0 : index
    %c0_6 = arith.constant 0 : index
    %6 = vector.load %arg1[%c0_5, %c0_6] : memref<128x128xf32, #tpu.memory_space<vmem>>, vector<128x128xf32>
    %cst_7 = arith.constant 0.000000e+00 : f32
    %7 = vector.broadcast %cst_7 : f32 to vector<128x128xf32>
    %8 = arith.subf %7, %5 : vector<128x128xf32>
    %cst_8 = arith.constant 0.000000e+00 : f32
    %9 = vector.broadcast %cst_8 : f32 to vector<128x128xf32>
    %10 = arith.maximumf %8, %9 : vector<128x128xf32>
    %11 = vector.broadcast %cst_8 : f32 to vector<128x128xf32>
    %12 = arith.subf %8, %11 : vector<128x128xf32>
    %13 = arith.cmpf one, %12, %12 : vector<128x128xf32>
    %14 = vector.broadcast %cst_8 : f32 to vector<128x128xf32>
    %15 = arith.addf %8, %14 : vector<128x128xf32>
    %16 = math.absf %12 : vector<128x128xf32>
    %cst_9 = arith.constant 0.000000e+00 : f32
    %17 = vector.broadcast %cst_9 : f32 to vector<128x128xf32>
    %18 = arith.subf %17, %16 : vector<128x128xf32>
    %19 = math.exp %18 : vector<128x128xf32>
    %20 = math.log1p %19 : vector<128x128xf32>
    %21 = arith.addf %10, %20 : vector<128x128xf32>
    %22 = arith.select %13, %15, %21 : vector<128x128xi1>, vector<128x128xf32>
    %cst_10 = arith.constant 0.000000e+00 : f32
    %23 = vector.broadcast %cst_10 : f32 to vector<128x128xf32>
    %24 = arith.subf %23, %22 : vector<128x128xf32>
    %cst_11 = arith.constant 2.000000e+00 : f32
    %25 = vector.broadcast %cst_11 : f32 to vector<128x128xf32>
    %26 = arith.mulf %25, %6 : vector<128x128xf32>
    %cst_12 = arith.constant 1.000000e+00 : f32
    %27 = vector.broadcast %cst_12 : f32 to vector<128x128xf32>
    %28 = arith.subf %26, %27 : vector<128x128xf32>
    %29 = arith.mulf %28, %24 : vector<128x128xf32>
    %cst_13 = arith.constant 1.000000e+00 : f32
    %30 = vector.broadcast %cst_13 : f32 to vector<128x128xf32>
    %31 = arith.subf %30, %6 : vector<128x128xf32>
    %32 = arith.addf %29, %31 : vector<128x128xf32>
    %c0_14 = arith.constant 0 : index
    %c0_15 = arith.constant 0 : index
    %33 = vector.load %arg4[%c0_14, %c0_15] : memref<128x1xf32, #tpu.memory_space<vmem>>, vector<128x1xf32>
    %cst_16 = arith.constant dense<0.000000e+00> : vector<128x1xf32>
    %34 = tpu.matmul %32, %33, %cst_16 {dimension_numbers = #tpu.dot_dimension_numbers<[1], [0], [0], [1], [0, 0, 1, 1], [], []>} : vector<128x128xf32>, vector<128x1xf32>, vector<128x1xf32> -> vector<128x1xf32>
    %c0_17 = arith.constant 0 : index
    %c0_18 = arith.constant 0 : index
    %35 = vector.load %arg5[%c0_17, %c0_18] : memref<128x1xf32, #tpu.memory_space<vmem>>, vector<128x1xf32>
    tpu.vector_store %arg5[%c0_17, %c0_18], %34 {strides = array<i32>} : memref<128x1xf32, #tpu.memory_space<vmem>>, vector<128x1xf32>,
    return
  }
  func.func @transform_0(%arg0: i32) -> (i32, i32) {
    %c0_i32 = arith.constant 0 : i32
    %c0_i32_0 = arith.constant 0 : i32
    return %arg0, %c0_i32 : i32, i32
  }
  func.func @transform_1(%arg0: i32) -> (i32, i32) {
    %c0_i32 = arith.constant 0 : i32
    %c0_i32_0 = arith.constant 0 : i32
    %c0_i32_1 = arith.constant 0 : i32
    return %c0_i32, %c0_i32_0 : i32, i32
  }
  func.func @transform_2(%arg0: i32) -> (i32, i32) {
    %c0_i32 = arith.constant 0 : i32
    %c0_i32_0 = arith.constant 0 : i32
    %c0_i32_1 = arith.constant 0 : i32
    return %c0_i32, %c0_i32_0 : i32, i32
  }
  func.func @transform_3(%arg0: i32) -> (i32, i32) {
    %c0_i32 = arith.constant 0 : i32
    %c0_i32_0 = arith.constant 0 : i32
    %c0_i32_1 = arith.constant 0 : i32
    return %c0_i32, %c0_i32_0 : i32, i32
  }
  func.func @transform_4(%arg0: i32) -> (i32, i32) {
    %c0_i32 = arith.constant 0 : i32
    %c0_i32_0 = arith.constant 0 : i32
    return %arg0, %c0_i32 : i32, i32
  }
}

</mosaic_0001>

<bundles_post_ra>
// kernel: tpu_custom_call.1
= control target key start
LH: loop header
LB: loop body
LE: loop exit
PB: predicated region body
PF: predicated region fallthrough
CT: control target
= control target key end

     0   :  { %9 = vsyncpa [#allocation3], 0  ;;  %s779_s18 = smov [#allocation2]   ;;  %s780_s20 = smov 128   ;;  %s1392_s0 = inlined_call_operand.vmem [shape: f32[128,128], index: 0, kind: input, shape index: {}]   ;;  %s1393_s1 = inlined_call_operand.hbm [shape: f32[128,128], index: 1, kind: input, shape index: {}]   ;;  %s1394_s2 = inlined_call_operand.vmem [shape: f32[1,128], index: 2, kind: input, shape index: {}]   ;;  %s1395_s3 = inlined_call_operand.vmem [shape: f32[128,1], index: 3, kind: input, shape index: {}]   ;;  %s1396_s4 = inlined_call_operand.vmem [shape: f32[128,1], index: 4, kind: output, shape index: {}]  }
   0x1   :  { %s16_s17 = sshll.u32 %s1393_s1, 4  ;;  %s18_s19 = sshll.u32 %s779_s18, 4  ;;  %s17_s17 = int_to_ptr.hbm [resolvable:$true] %s16_s17  ;;  %s19_s19 = int_to_ptr.vmem [resolvable:$true] %s18_s19 }
   0x2   :  { %s781_s21 = smov 8  }
   0x3   :  { %24 = dma.hbm_to_vmem [thread:$0]  %s17_s17, 2048, %s19_s19, [#allocation3], %s780_s20, %s780_s20, %s781_s21  }
   0x4   :  { %777 = dma.done.wait [#allocation3], 2048  }
   0x5   :  { %778 = vsyncadd [#allocation3], 4294965248  ;;  %v64_v0 = vld [vmem:[#allocation2 + $0x78] sm:$0xff]  ;;  %v63_v1 = vld [vmem:[#allocation2 + $0x70] sm:$0xff] }
   0x6   :  { %69 = vmatpush.msra.mxu0 %v64_v0  ;;  %653 = vmatpush.msra.mxu2 %v64_v0  ;;  %v62_v2 = vld [vmem:[#allocation2 + $0x68] sm:$0xff]  ;;  %v61_v3 = vld [vmem:[#allocation2 + $0x60] sm:$0xff]  ;;  %v60_v4 = vld [vmem:[#allocation2 + $0x58] sm:$0xff] }
   0x7   :  { %v59_v5 = vld [vmem:[#allocation2 + $0x50] sm:$0xff]  ;;  %v58_v6 = vld [vmem:[#allocation2 + $0x48] sm:$0xff]  ;;  %v57_v7 = vld [vmem:[#allocation2 + $0x40] sm:$0xff] }
   0x8   :  { %70 = vmatpush.msra.mxu0 %v63_v1  ;;  %654 = vmatpush.msra.mxu2 %v63_v1  ;;  %v56_v8 = vld [vmem:[#allocation2 + $0x38] sm:$0xff]  ;;  %v55_v9 = vld [vmem:[#allocation2 + $0x30] sm:$0xff]  ;;  %v54_v10 = vld [vmem:[#allocation2 + $0x28] sm:$0xff] }
   0x9   :  { %v53_v11 = vld [vmem:[#allocation2 + $0x20] sm:$0xff]  ;;  %v52_v12 = vld [vmem:[#allocation2 + $0x18] sm:$0xff]  ;;  %v51_v13 = vld [vmem:[#allocation2 + $0x10] sm:$0xff] }
   0xa   :  { %71 = vmatpush.msra.mxu0 %v62_v2  ;;  %655 = vmatpush.msra.mxu2 %v62_v2  ;;  %v50_v14 = vld [vmem:[#allocation2 + $0x8] sm:$0xff]  ;;  %v49_v15 = vld [vmem:[#allocation2] sm:$0xff]  ;;  %v837_v20 = vld [vmem:[%s1392_s0 + $0x10] sm:$0xff] }
   0xb   :  { %v813_v16 = vld [vmem:[%s1392_s0] sm:$0xff]  ;;  %v825_v18 = vld [vmem:[%s1392_s0 + $0x8] sm:$0xff]  ;;  %v842_v21 = vld [vmem:[%s1392_s0 + $0x50] sm:$0xff] }
   0xc   :  { %72 = vmatpush.msra.mxu0 %v61_v3  ;;  %656 = vmatpush.msra.mxu2 %v61_v3  ;;  %v818_v17 = vld [vmem:[%s1392_s0 + $0x40] sm:$0xff]  ;;  %v830_v19 = vld [vmem:[%s1392_s0 + $0x48] sm:$0xff]  ;;  %v849_v22 = vld [vmem:[%s1392_s0 + $0x18] sm:$0xff]  ;;  %v454_v57 = vmul.f32 2.0, %v813_v16  ;;  %v455_v62 = vmul.f32 2.0, %v825_v18 }
   0xd   :  { %v854_v23 = vld [vmem:[%s1392_s0 + $0x58] sm:$0xff]  ;;  %v861_v24 = vld [vmem:[%s1392_s0 + $0x20] sm:$0xff]  ;;  %v873_v26 = vld [vmem:[%s1392_s0 + $0x28] sm:$0xff]  ;;  %v462_v61 = vmul.f32 2.0, %v818_v17  ;;  %v463_v63 = vmul.f32 2.0, %v830_v19 }
   0xe   :  { %73 = vmatpush.msra.mxu0 %v60_v4  ;;  %657 = vmatpush.msra.mxu2 %v60_v4  ;;  %v866_v25 = vld [vmem:[%s1392_s0 + $0x60] sm:$0xff]  ;;  %v878_v27 = vld [vmem:[%s1392_s0 + $0x68] sm:$0xff]  ;;  %v885_v28 = vld [vmem:[%s1392_s0 + $0x30] sm:$0xff]  ;;  %v974_v2 = vadd.f32 -1.0, %v454_v57 }
   0xf   :  { %v890_v29 = vld [vmem:[%s1392_s0 + $0x70] sm:$0xff]  ;;  %v897_v30 = vld [vmem:[%s1392_s0 + $0x38] sm:$0xff]  ;;  %v547_v34 = vld [vmem:[%s1395_s3 + $0x68] sm:$0xff] }
  0x10   :  { %74 = vmatpush.msra.mxu0 %v59_v5  ;;  %658 = vmatpush.msra.mxu2 %v59_v5  ;;  %1400 = vst [vmem:[#allocation5_spill] sm:$0xff] %v890_v29  ;;  %v902_v31 = vld [vmem:[%s1392_s0 + $0x78] sm:$0xff]  ;;  %v548_v33 = vld [vmem:[%s1395_s3 + $0x70] sm:$0xff]  ;;  %v546_v35 = vld [vmem:[%s1395_s3 + $0x60] sm:$0xff]  ;;  %v977_v5 = vadd.f32 -1.0, %v462_v61 }
  0x11   :  { %1401 = vst [vmem:[#allocation6_spill] sm:$0xff] %v902_v31  ;;  %v549_v32 = vld [vmem:[%s1395_s3 + $0x78] sm:$0xff]  ;;  %v544_v37 = vld [vmem:[%s1395_s3 + $0x50] sm:$0xff]  ;;  %v543_v38 = vld [vmem:[%s1395_s3 + $0x48] sm:$0xff] }
  0x12   :  { %75 = vmatpush.msra.mxu0 %v58_v6  ;;  %659 = vmatpush.msra.mxu2 %v58_v6  ;;  %v545_v36 = vld [vmem:[%s1395_s3 + $0x58] sm:$0xff]  ;;  %v542_v39 = vld [vmem:[%s1395_s3 + $0x40] sm:$0xff]  ;;  %v540_v41 = vld [vmem:[%s1395_s3 + $0x30] sm:$0xff]  ;;  %v979_v6 = vadd.f32 -1.0, %v455_v62 }
  0x13   :  { %550 = vmatpush.msra.mxu1 %v549_v32  ;;  %669 = vmatpush.msra.mxu3 %v549_v32  ;;  %v541_v40 = vld [vmem:[%s1395_s3 + $0x38] sm:$0xff]  ;;  %v539_v42 = vld [vmem:[%s1395_s3 + $0x28] sm:$0xff]  ;;  %v942_v43 = vld [vmem:[%s1394_s2] ss:$0 sm:$0xff]  ;;  %v458_v32 = vmul.f32 2.0, %v861_v24 }
  0x14   :  { %76 = vmatpush.msra.mxu0 %v57_v7  ;;  %660 = vmatpush.msra.mxu2 %v57_v7  ;;  %v538_v44 = vld [vmem:[%s1395_s3 + $0x20] sm:$0xff]  ;;  %v537_v45 = vld [vmem:[%s1395_s3 + $0x18] sm:$0xff]  ;;  %v536_v48 = vld [vmem:[%s1395_s3 + $0x10] sm:$0xff]  ;;  %v981_v7 = vadd.f32 -1.0, %v463_v63 }
  0x15   :  { %551 = vmatpush.msra.mxu1 %v548_v33  ;;  %670 = vmatpush.msra.mxu3 %v548_v33  ;;  %v535_v50 = vld [vmem:[%s1395_s3 + $0x8] sm:$0xff]  ;;  %v534_v52 = vld [vmem:[%s1395_s3] sm:$0xff]  ;;  %v466_v33 = vmul.f32 2.0, %v866_v25 }
  0x16   :  { %77 = vmatpush.msra.mxu0 %v56_v8  ;;  %661 = vmatpush.msra.mxu2 %v56_v8  ;;  %v456_v8 = vmul.f32 2.0, %v837_v20 }
  0x17   :  { %552 = vmatpush.msra.mxu1 %v547_v34  ;;  %671 = vmatpush.msra.mxu3 %v547_v34 }
  0x18   :  { %78 = vmatpush.msra.mxu0 %v55_v9  ;;  %662 = vmatpush.msra.mxu2 %v55_v9 }
  0x19   :  { %553 = vmatpush.msra.mxu1 %v546_v35  ;;  %672 = vmatpush.msra.mxu3 %v546_v35 }
  0x1a   :  { %79 = vmatpush.msra.mxu0 %v54_v10  ;;  %663 = vmatpush.msra.mxu2 %v54_v10  ;;  %v464_v10 = vmul.f32 2.0, %v842_v21 }
  0x1b   :  { %554 = vmatpush.msra.mxu1 %v545_v36  ;;  %673 = vmatpush.msra.mxu3 %v545_v36 }
  0x1c   :  { %80 = vmatpush.msra.mxu0 %v53_v11  ;;  %664 = vmatpush.msra.mxu2 %v53_v11 }
  0x1d   :  { %555 = vmatpush.msra.mxu1 %v544_v37  ;;  %674 = vmatpush.msra.mxu3 %v544_v37 }
  0x1e   :  { %81 = vmatpush.msra.mxu0 %v52_v12  ;;  %665 = vmatpush.msra.mxu2 %v52_v12 }
  0x1f   :  { %556 = vmatpush.msra.mxu1 %v543_v38  ;;  %675 = vmatpush.msra.mxu3 %v543_v38 }
  0x20   :  { %82 = vmatpush.msra.mxu0 %v51_v13  ;;  %666 = vmatpush.msra.mxu2 %v51_v13 }
  0x21   :  { %557 = vmatpush.msra.mxu1 %v542_v39  ;;  %676 = vmatpush.msra.mxu3 %v542_v39  ;;  %v459_v39 = vmul.f32 2.0, %v873_v26 }
  0x22   :  { %83 = vmatpush.msra.mxu0 %v50_v14  ;;  %667 = vmatpush.msra.mxu2 %v50_v14  ;;  %v457_v14 = vmul.f32 2.0, %v849_v22 }
  0x23   :  { %558 = vmatpush.msra.mxu1 %v541_v40  ;;  %677 = vmatpush.msra.mxu3 %v541_v40  ;;  %v467_v40 = vmul.f32 2.0, %v878_v27 }
  0x24   :  { %84 = vmatpush.msra.mxu0 %v49_v15  ;;  %668 = vmatpush.msra.mxu2 %v49_v15  ;;  %v465_v15 = vmul.f32 2.0, %v854_v23 }
  0x25   :  { %85 = vmatmul.f32.vlgmr.msra.gmra.mxu0 %v813_v16  ;;  %109 = vmatmul.f32.vlgmr.msra.gmra.mxu2 %v818_v17  ;;  %v1014_v57 = vadd.f32 -1.0, %v467_v40  ;;  %v502_v40 = vsub.f32 1.0, %v813_v16 }
  0x26   :  { %559 = vmatpush.msra.mxu1 %v540_v41  ;;  %678 = vmatpush.msra.mxu3 %v540_v41 }
  0x28   :  { %560 = vmatpush.msra.mxu1 %v539_v42  ;;  %679 = vmatpush.msra.mxu3 %v539_v42 }
  0x2a   :  { %561 = vmatpush.msra.mxu1 %v538_v44  ;;  %680 = vmatpush.msra.mxu3 %v538_v44  ;;  %v995_v44 = vadd.f32 -1.0, %v456_v8  ;;  %v1020_v8 = vmul.f32 2.0, %v890_v29 }
  0x2c   :  { %562 = vmatpush.msra.mxu1 %v537_v45  ;;  %681 = vmatpush.msra.mxu3 %v537_v45 }
  0x2d   :  { %88 = vmatmul.f32.gmra.mxu0 %v825_v18  ;;  %112 = vmatmul.f32.gmra.mxu2 %v830_v19 }
  0x2e   :  { %563 = vmatpush.msra.mxu1 %v536_v48  ;;  %682 = vmatpush.msra.mxu3 %v536_v48  ;;  %v1002_v48 = vadd.f32 -1.0, %v457_v14 }
  0x30   :  { %564 = vmatpush.msra.mxu1 %v535_v50  ;;  %683 = vmatpush.msra.mxu3 %v535_v50  ;;  %v460_v50 = vmul.f32 2.0, %v885_v28 }
  0x32   :  { %565 = vmatpush.msra.mxu1 %v534_v52  ;;  %684 = vmatpush.msra.mxu3 %v534_v52  ;;  %v1007_v52 = vadd.f32 -1.0, %v458_v32 }
  0x35   :  { %91 = vmatmul.f32.gmra.mxu0 %v837_v20  ;;  %115 = vmatmul.f32.gmra.mxu2 %v842_v21 }
  0x3d   :  { %94 = vmatmul.f32.gmra.mxu0 %v849_v22  ;;  %118 = vmatmul.f32.gmra.mxu2 %v854_v23 }
  0x45   :  { %97 = vmatmul.f32.gmra.mxu0 %v861_v24  ;;  %121 = vmatmul.f32.gmra.mxu2 %v866_v25 }
  0x4d   :  { %100 = vmatmul.f32.gmra.mxu0 %v873_v26  ;;  %124 = vmatmul.f32.gmra.mxu2 %v878_v27 }
  0x55   :  { %103 = vmatmul.f32.gmra.mxu0 %v885_v28  ;;  %127 = vmatmul.f32.gmra.mxu2 %v890_v29 }
  0x5d   :  { %106 = vmatmul.f32.gmra.mxu0 %v897_v30  ;;  %130 = vmatmul.f32.gmra.mxu2 %v902_v31 }
  0xa2   :  { %v86_v46 = vpop.f32.mrf.mxu0 }
  0xa3   :  { %v87_v47 = vadd.f32 %v942_v43, %v86_v46 }
  0xa5   :  { %v954_v49 = vsub.f32 0.0, %v87_v47  ;;  %v1000_v47 = vadd.f32 -1.0, %v464_v10 }
  0xa7   :  { %v198_v51 = vand.u32 2147483647, %v954_v49  ;;  %vm166_vm0 = vcmp.ne.f32.partialorder %v954_v49, %v954_v49 }
  0xa8   :  { %v110_v53 = vpop.f32.mrf.mxu2 }
  0xa9   :  { %v214_v54 = vsub.f32 0.0, %v198_v51  ;;  %v111_v55 = vadd.f32 %v942_v43, %v110_v53  ;;  %v1005_v51 = vadd.f32 -1.0, %v465_v15 }
  0xaa   :  { %v89_v56 = vpop.f32.mrf.mxu0 }
  0xab   :  { %v230_v58 = vmul.f32 1.442695, %v214_v54  ;;  %v965_v59 = vsub.f32 0.0, %v111_v55  ;;  %v90_v60 = vadd.f32 %v942_v43, %v89_v56  ;;  %v1010_v55 = vadd.f32 -1.0, %v466_v33 }
  0xac   :  { %v1012_v56 = vadd.f32 -1.0, %v459_v39  ;;  %v150_v33 = vmax.f32 %v954_v49, 0.0 }
  0xad   :  { %689 = vpow2.f32 %v230_v58  ;;  %v206_v0 = vand.u32 2147483647, %v965_v59  ;;  %v972_v1 = vsub.f32 0.0, %v90_v60  ;;  %vm174_vm2 = vcmp.ne.f32.partialorder %v965_v59, %v965_v59 }
  0xaf   :  { %v222_v3 = vsub.f32 0.0, %v206_v0  ;;  %v199_v4 = vand.u32 2147483647, %v972_v1  ;;  %vm167_vm3 = vcmp.ne.f32.partialorder %v972_v1, %v972_v1 }
  0xb0   :  { %v113_v9 = vpop.f32.mrf.mxu2 }
  0xb1   :  { %v246_v11 = vmul.f32 1.442695, %v222_v3  ;;  %v215_v12 = vsub.f32 0.0, %v199_v4  ;;  %v114_v13 = vadd.f32 %v942_v43, %v113_v9  ;;  %v1017_v4 = vadd.f32 -1.0, %v460_v50 }
  0xb2   :  { %v92_v34 = vpop.f32.mrf.mxu0 }
  0xb3   :  { %v690_v35 = vpop.eup %689  ;;  %691 = vpow2.f32 %v246_v11  ;;  %v232_v36 = vmul.f32 1.442695, %v215_v12  ;;  %v990_v37 = vsub.f32 0.0, %v114_v13  ;;  %v93_v38 = vadd.f32 %v942_v43, %v92_v34 }
  0xb4   :  { %v262_v41 = vadd.f32 1.0, %v690_v35  ;;  %v265_v42 = vmul.f32 -0.5, %v690_v35  ;;  %v268_v3 = vand.u32 2147483647, %v690_v35 }
  0xb5   :  { %693 = vpow2.f32 %v232_v36  ;;  %v207_v45 = vand.u32 2147483647, %v990_v37  ;;  %v998_v46 = vsub.f32 0.0, %v93_v38  ;;  %vm175_vm6 = vcmp.ne.f32.partialorder %v990_v37, %v990_v37 }
  0xb6   :  { %695 = vlog2.f32 %v262_v41  ;;  %v266_v60 = vadd.f32 1.0, %v265_v42  ;;  %vm1029_vm1 = vcmp.lt.f32.partialorder %v268_v3, 0.0004427343 }
  0xb7   :  { %v223_v53 = vsub.f32 0.0, %v207_v45  ;;  %v200_v54 = vand.u32 2147483647, %v998_v46  ;;  %vm168_vm8 = vcmp.ne.f32.partialorder %v998_v46, %v998_v46 }
  0xb8   :  { %v116_v58 = vpop.f32.mrf.mxu2  ;;  %v267_v34 = vmul.f32 %v690_v35, %v266_v60  ;;  %v158_v35 = vmax.f32 %v965_v59, 0.0 }
  0xb9   :  { %v692_v61 = vpop.eup %691  ;;  %v248_v62 = vmul.f32 1.442695, %v223_v53  ;;  %v216_v63 = vsub.f32 0.0, %v200_v54  ;;  %v117_v0 = vadd.f32 %v942_v43, %v116_v58  ;;  %v151_v54 = vmax.f32 %v972_v1, 0.0 }
  0xba   :  { %v95_v9 = vpop.f32.mrf.mxu0  ;;  %v334_v10 = vadd.f32 1.0, %v692_v61  ;;  %v337_v11 = vmul.f32 -0.5, %v692_v61 }
  0xbb   :  { %v694_v12 = vpop.eup %693  ;;  %697 = vpow2.f32 %v248_v62  ;;  %v234_v13 = vmul.f32 1.442695, %v216_v63  ;;  %v1022_v14 = vsub.f32 0.0, %v117_v0  ;;  %v96_v15 = vadd.f32 %v942_v43, %v95_v9 }
  0xbc   :  { %v696_v32 = vpop.eup %695  ;;  %699 = vlog2.f32 %v334_v10  ;;  %v271_v36 = vadd.f32 1.0, %v694_v12  ;;  %v274_v45 = vmul.f32 -0.5, %v694_v12  ;;  %v338_v53 = vadd.f32 1.0, %v337_v11 }
  0xbd   :  { %v208_v38 = vand.u32 2147483647, %v1022_v14  ;;  %v1034_v41 = vsub.f32 0.0, %v96_v15  ;;  %v264_v42 = vmul.f32 0.6931472, %v696_v32  ;;  %vm176_vm10 = vcmp.ne.f32.partialorder %v1022_v14, %v1022_v14 }
  0xbe   :  { %701 = vlog2.f32 %v271_v36  ;;  %v275_v62 = vadd.f32 1.0, %v274_v45  ;;  %v340_v9 = vand.u32 2147483647, %v692_v61  ;;  %v277_v10 = vand.u32 2147483647, %v694_v12 }
  0xbf   :  { %703 = vpow2.f32 %v234_v13  ;;  %v224_v50 = vsub.f32 0.0, %v208_v38  ;;  %v270_v60 = vsel %vm1029_vm1, %v267_v34, %v264_v42  ;;  %v201_v15 = vand.u32 2147483647, %v1034_v41 }
  0xc0   :  { %v119_v58 = vpop.f32.mrf.mxu2  ;;  %v406_v3 = vadd.f32 %v270_v60, %v150_v33  ;;  %v339_v42 = vmul.f32 %v692_v61, %v338_v53  ;;  %v276_v13 = vmul.f32 %v694_v12, %v275_v62  ;;  %vm341_vm4 = vcmp.lt.f32.partialorder %v340_v9, 0.0004427343 }
  0xc1   :  { %v1043_v63 = vpop.eup %697  ;;  %v120_v0 = vadd.f32 %v942_v43, %v119_v58  ;;  %v250_v38 = vmul.f32 1.442695, %v224_v50  ;;  %v152_v50 = vmax.f32 %v998_v46, 0.0  ;;  %vm1063_vm5 = vcmp.lt.f32.partialorder %v277_v10, 0.0004427343 }
  0xc2   :  { %v700_v11 = vpop.eup %699  ;;  %v98_v32 = vpop.f32.mrf.mxu0  ;;  %v343_v36 = vadd.f32 1.0, %v1043_v63  ;;  %v346_v33 = vmul.f32 -0.5, %v1043_v63  ;;  %v422_v58 = vsel %vm166_vm0, %v954_v49, %v406_v3  ;;  %v217_v53 = vsub.f32 0.0, %v201_v15 }
  0xc3   :  { %v99_v39 = vadd.f32 %v942_v43, %v98_v32  ;;  %v336_v60 = vmul.f32 0.6931472, %v700_v11  ;;  %v1061_v32 = vsub.f32 0.0, %v120_v0  ;;  %v438_v16 = vsub.f32 0.0, %v422_v58 }
  0xc4   :  { %v702_v45 = vpop.eup %701  ;;  %705 = vlog2.f32 %v343_v36  ;;  %v347_v62 = vadd.f32 1.0, %v346_v33  ;;  %v511_v9 = vsub.f32 1.0, %v830_v19  ;;  %vm169_vm13 = vcmp.ne.f32.partialorder %v1034_v41, %v1034_v41 }
  0xc5   :  { %v1058_v34 = vpop.eup %703  ;;  %v342_v31 = vsel %vm341_vm4, %v339_v42, %v336_v60  ;;  %v273_v29 = vmul.f32 0.6931472, %v702_v45  ;;  %707 = vpow2.f32 %v250_v38  ;;  %v1067_v49 = vsub.f32 0.0, %v99_v39 }
  0xc6   :  { %v414_v12 = vadd.f32 %v342_v31, %v158_v35  ;;  %v486_v11 = vmul.f32 %v974_v2, %v438_v16  ;;  %v280_v10 = vadd.f32 1.0, %v1058_v34  ;;  %v209_v15 = vand.u32 2147483647, %v1061_v32 }
  0xc7   :  { %v279_v0 = vsel %vm1063_vm5, %v276_v13, %v273_v29  ;;  %v349_v2 = vand.u32 2147483647, %v1043_v63  ;;  %v160_v29 = vmax.f32 %v1022_v14, 0.0  ;;  %v236_v42 = vmul.f32 1.442695, %v217_v53 }
  0xc8   :  { %v122_v3 = vpop.f32.mrf.mxu2  ;;  %v430_v31 = vsel %vm174_vm2, %v965_v59, %v414_v12  ;;  %v518_v16 = vadd.f32 %v502_v40, %v486_v11  ;;  %v407_v39 = vadd.f32 %v279_v0, %v151_v54  ;;  %v202_v33 = vand.u32 2147483647, %v1067_v49 }
  0xc9   :  { %v123_v36 = vadd.f32 %v942_v43, %v122_v3  ;;  %v446_v38 = vsub.f32 0.0, %v430_v31  ;;  %v348_v58 = vmul.f32 %v1043_v63, %v347_v62  ;;  %709 = vlog2.f32 %v280_v10 }
  0xca   :  { %v706_v35 = vpop.eup %705  ;;  %v101_v13 = vpop.f32.mrf.mxu0  ;;  %566 = vmatmul.f32.vlgmr.msra.gmra.mxu1 %v518_v16  ;;  %v423_v59 = vsel %vm167_vm3, %v972_v1, %v407_v39  ;;  %v225_v54 = vsub.f32 0.0, %v209_v15  ;;  %vm350_vm7 = vcmp.lt.f32.partialorder %v349_v2, 0.0004427343  ;;  %v1406_v63 = vsub.f32 1.0, %v818_v17 }
  0xcb   :  { %v102_v45 = vadd.f32 %v942_v43, %v101_v13  ;;  %v494_v60 = vmul.f32 %v977_v5, %v446_v38  ;;  %v345_v61 = vmul.f32 0.6931472, %v706_v35  ;;  %v1092_v40 = vpop.eup %707  ;;  %v1094_v53 = vsub.f32 0.0, %v123_v36 }
  0xcc   :  { %v439_v3 = vsub.f32 0.0, %v423_v59  ;;  %v283_v11 = vmul.f32 -0.5, %v1058_v34  ;;  %v153_v0 = vmax.f32 %v1034_v41, 0.0  ;;  %711 = vpow2.f32 %v236_v42 }
  0xcd   :  { %v1096_v12 = vsub.f32 0.0, %v102_v45  ;;  %v526_v62 = vadd.f32 %v1406_v63, %v494_v60  ;;  %v351_v5 = vsel %vm350_vm7, %v348_v58, %v345_v61  ;;  %v218_v1 = vsub.f32 0.0, %v202_v33 }
  0xce   :  { %v1407_v10 = vmax.f32 %v990_v37, 0.0  ;;  %v487_v36 = vmul.f32 %v979_v6, %v439_v3  ;;  %v284_v17 = vadd.f32 1.0, %v283_v11  ;;  %v286_v2 = vand.u32 2147483647, %v1058_v34 }
  0xcf   :  { %590 = vmatmul.f32.vlgmr.msra.gmra.mxu3 %v526_v62  ;;  %v352_v35 = vadd.f32 1.0, %v1092_v40  ;;  %v252_v16 = vmul.f32 1.442695, %v225_v54  ;;  %v210_v13 = vand.u32 2147483647, %v1094_v53  ;;  %v710_v42 = vpop.eup %709  ;;  %v1408_v33 = vsub.f32 1.0, %v825_v18 }
  0xd0   :  { %v415_v31 = vadd.f32 %v351_v5, %v1407_v10  ;;  %v125_v15 = vpop.f32.mrf.mxu2  ;;  %v203_v6 = vand.u32 2147483647, %v1096_v12  ;;  %v285_v59 = vmul.f32 %v1058_v34, %v284_v17  ;;  %v238_v61 = vmul.f32 1.442695, %v218_v1 }
  0xd1   :  { %v126_v38 = vadd.f32 %v942_v43, %v125_v15  ;;  %v519_v45 = vadd.f32 %v1408_v33, %v487_v36  ;;  %vm1122_vm9 = vcmp.lt.f32.partialorder %v286_v2, 0.0004427343  ;;  %v282_v3 = vmul.f32 0.6931472, %v710_v42 }
  0xd2   :  { %v431_v39 = vsel %vm175_vm6, %v990_v37, %v415_v31  ;;  %v104_v58 = vpop.f32.mrf.mxu0  ;;  %713 = vlog2.f32 %v352_v35  ;;  %v355_v18 = vmul.f32 -0.5, %v1092_v40  ;;  %v1128_v5 = vpop.eup %711  ;;  %v161_v34 = vmax.f32 %v1061_v32, 0.0 }
  0xd3   :  { %v447_v60 = vsub.f32 0.0, %v431_v39  ;;  %v1119_v54 = vsub.f32 0.0, %v126_v38  ;;  %v105_v63 = vadd.f32 %v942_v43, %v104_v58  ;;  %569 = vmatmul.f32.gmra.mxu1 %v519_v45  ;;  %v226_v11 = vsub.f32 0.0, %v210_v13 }
  0xd4   :  { %v504_v10 = vsub.f32 1.0, %v837_v20  ;;  %v154_v31 = vmax.f32 %v1067_v49, 0.0  ;;  %v219_v15 = vsub.f32 0.0, %v203_v6  ;;  %715 = vpow2.f32 %v252_v16 }
  0xd5   :  { %v495_v37 = vmul.f32 %v981_v7, %v447_v60  ;;  %v1131_v1 = vsub.f32 0.0, %v105_v63  ;;  %v288_v7 = vsel %vm1122_vm9, %v285_v59, %v282_v3  ;;  %v211_v17 = vand.u32 2147483647, %v1119_v54 }
  0xd6   :  { %v408_v2 = vadd.f32 %v288_v7, %v152_v50  ;;  %v356_v35 = vadd.f32 1.0, %v355_v18  ;;  %717 = vpow2.f32 %v238_v61  ;;  %v162_v13 = vmax.f32 %v1094_v53, 0.0 }
  0xd7   :  { %v527_v36 = vadd.f32 %v511_v9, %v495_v37  ;;  %v155_v20 = vmax.f32 %v1096_v12, 0.0  ;;  %v204_v38 = vand.u32 2147483647, %v1131_v1  ;;  %v254_v9 = vmul.f32 1.442695, %v226_v11 }
  0xd8   :  { %v128_v19 = vpop.f32.mrf.mxu2  ;;  %v424_v50 = vsel %vm168_vm8, %v998_v46, %v408_v2  ;;  %v358_v39 = vand.u32 2147483647, %v1092_v40  ;;  %v714_v42 = vpop.eup %713  ;;  %v240_v6 = vmul.f32 1.442695, %v219_v15  ;;  %v289_v58 = vadd.f32 1.0, %v1128_v5 }
  0xd9   :  { %593 = vmatmul.f32.gmra.mxu3 %v527_v36  ;;  %v129_v16 = vadd.f32 %v942_v43, %v128_v19  ;;  %v440_v33 = vsub.f32 0.0, %v424_v50  ;;  %v292_v60 = vmul.f32 -0.5, %v1128_v5  ;;  %v227_v59 = vsub.f32 0.0, %v211_v17 }
  0xda   :  { %v107_v45 = vpop.f32.mrf.mxu0  ;;  %v357_v62 = vmul.f32 %v1092_v40, %v356_v35  ;;  %v220_v37 = vsub.f32 0.0, %v204_v38  ;;  %v354_v3 = vmul.f32 0.6931472, %v714_v42  ;;  %719 = vlog2.f32 %v289_v58  ;;  %v716_v18 = vpop.eup %715 }
  0xdb   :  { %v1155_v61 = vsub.f32 0.0, %v129_v16  ;;  %v108_v63 = vadd.f32 %v942_v43, %v107_v45  ;;  %v488_v46 = vmul.f32 %v995_v44, %v440_v33  ;;  %vm359_vm11 = vcmp.lt.f32.partialorder %v358_v39, 0.0004427343 }
  0xdc   :  { %v293_v36 = vadd.f32 1.0, %v292_v60  ;;  %v1163_v7 = vpop.eup %717  ;;  %721 = vpow2.f32 %v254_v9  ;;  %v360_v2 = vsel %vm359_vm11, %v357_v62, %v354_v3  ;;  %v295_v19 = vand.u32 2147483647, %v1128_v5 }
  0xdd   :  { %v212_v11 = vand.u32 2147483647, %v1155_v61  ;;  %v1161_v15 = vsub.f32 0.0, %v108_v63  ;;  %v520_v17 = vadd.f32 %v504_v10, %v488_v46  ;;  %723 = vpow2.f32 %v240_v6 }
  0xde   :  { %v256_v40 = vmul.f32 1.442695, %v227_v59  ;;  %v416_v44 = vadd.f32 %v360_v2, %v160_v29  ;;  %v163_v38 = vmax.f32 %v1119_v54, 0.0  ;;  %v242_v16 = vmul.f32 1.442695, %v220_v37 }
  0xdf   :  { %v228_v35 = vsub.f32 0.0, %v212_v11  ;;  %572 = vmatmul.f32.gmra.mxu1 %v520_v17  ;;  %v205_v50 = vand.u32 2147483647, %v1161_v15  ;;  %v361_v42 = vadd.f32 1.0, %v716_v18  ;;  %v294_v6 = vmul.f32 %v1128_v5, %v293_v36 }
  0xe0   :  { %v131_v39 = vpop.f32.mrf.mxu2  ;;  %v432_v10 = vsel %vm176_vm10, %v1022_v14, %v416_v44  ;;  %v364_v33 = vmul.f32 -0.5, %v716_v18  ;;  %v720_v45 = vpop.eup %719  ;;  %v512_v58 = vsub.f32 1.0, %v842_v21  ;;  %vm1177_vm12 = vcmp.lt.f32.partialorder %v295_v19, 0.0004427343 }
  0xe1   :  { %v132_v9 = vadd.f32 %v942_v43, %v131_v39  ;;  %v448_v29 = vsub.f32 0.0, %v432_v10  ;;  %725 = vlog2.f32 %v361_v42  ;;  %v156_v59 = vmax.f32 %v1131_v1, 0.0 }
  0xe2   :  { %v258_v63 = vmul.f32 1.442695, %v228_v35  ;;  %v291_v14 = vmul.f32 0.6931472, %v720_v45  ;;  %v1184_v37 = vpop.eup %721  ;;  %727 = vpow2.f32 %v256_v40  ;;  %v221_v43 = vsub.f32 0.0, %v205_v50 }
  0xe3   :  { %v1182_v62 = vsub.f32 0.0, %v132_v9  ;;  %v496_v5 = vmul.f32 %v1000_v47, %v448_v29  ;;  %v1189_v21 = vpop.eup %723  ;;  %729 = vpow2.f32 %v242_v16  ;;  %v505_v3 = vsub.f32 1.0, %v849_v22 }
  0xe4   :  { %v297_v46 = vsel %vm1177_vm12, %v294_v6, %v291_v14  ;;  %v365_v11 = vadd.f32 1.0, %v364_v33  ;;  %v367_v2 = vand.u32 2147483647, %v716_v18  ;;  %v298_v19 = vadd.f32 1.0, %v1163_v7 }
  0xe5   :  { %v528_v36 = vadd.f32 %v512_v58, %v496_v5  ;;  %v409_v17 = vadd.f32 %v297_v46, %v153_v0  ;;  %731 = vpow2.f32 %v258_v63  ;;  %v213_v47 = vand.u32 2147483647, %v1182_v62 }
  0xe6   :  { %vm177_vm14 = vcmp.ne.f32.partialorder %v1061_v32, %v1061_v32  ;;  %v301_v40 = vmul.f32 -0.5, %v1163_v7  ;;  %v244_v44 = vmul.f32 1.442695, %v221_v43  ;;  %733 = vlog2.f32 %v298_v19 }
  0xe7   :  { %v726_v35 = vpop.eup %725  ;;  %596 = vmatmul.f32.gmra.mxu3 %v528_v36  ;;  %v425_v22 = vsel %vm169_vm13, %v1034_v41, %v409_v17  ;;  %v370_v0 = vadd.f32 1.0, %v1184_v37  ;;  %v366_v39 = vmul.f32 %v716_v18, %v365_v11  ;;  %vm368_vm15 = vcmp.lt.f32.partialorder %v367_v2, 0.0004427343 }
  0xe8   :  { %v441_v16 = vsub.f32 0.0, %v425_v22  ;;  %v363_v50 = vmul.f32 0.6931472, %v726_v35  ;;  %v302_v42 = vadd.f32 1.0, %v301_v40  ;;  %v1206_v10 = vpop.eup %727  ;;  %v304_v9 = vand.u32 2147483647, %v1163_v7 }
  0xe9   :  { %735 = vlog2.f32 %v370_v0  ;;  %v373_v6 = vmul.f32 -0.5, %v1184_v37  ;;  %v1210_v33 = vpop.eup %729  ;;  %v229_v45 = vsub.f32 0.0, %v213_v47  ;;  %v513_v58 = vsub.f32 1.0, %v854_v23 }
  0xea   :  { %v489_v41 = vmul.f32 %v1002_v48, %v441_v16  ;;  %v369_v29 = vsel %vm368_vm15, %v366_v39, %v363_v50  ;;  %737 = vpow2.f32 %v244_v44  ;;  %vm170_vm0 = vcmp.ne.f32.partialorder %v1067_v49, %v1067_v49 }
  0xeb   :  { %v417_v18 = vadd.f32 %v369_v29, %v161_v34  ;;  %v374_v60 = vadd.f32 1.0, %v373_v6  ;;  %v1218_v63 = vpop.eup %731  ;;  %v303_v43 = vmul.f32 %v1163_v7, %v302_v42  ;;  %v307_v5 = vadd.f32 1.0, %v1189_v21 }
  0xec   :  { %v521_v14 = vadd.f32 %v505_v3, %v489_v41  ;;  %v310_v48 = vmul.f32 -0.5, %v1189_v21  ;;  %v734_v46 = vpop.eup %733  ;;  %vm1227_vm1 = vcmp.lt.f32.partialorder %v304_v9, 0.0004427343  ;;  %v506_v11 = vsub.f32 1.0, %v861_v24 }
  0xed   :  { %v433_v23 = vsel %vm177_vm14, %v1061_v32, %v417_v18  ;;  %v376_v3 = vand.u32 2147483647, %v1184_v37  ;;  %v260_v36 = vmul.f32 1.442695, %v229_v45  ;;  %v300_v17 = vmul.f32 0.6931472, %v734_v46 }
  0xee   :  { %575 = vmatmul.f32.gmra.mxu1 %v521_v14  ;;  %v449_v7 = vsub.f32 0.0, %v433_v23  ;;  %739 = vlog2.f32 %v307_v5  ;;  %v375_v19 = vmul.f32 %v1184_v37, %v374_v60  ;;  %v311_v47 = vadd.f32 1.0, %v310_v48 }
  0xef   :  { %v736_v2 = vpop.eup %735  ;;  %v379_v40 = vadd.f32 1.0, %v1206_v10  ;;  %v382_v32 = vmul.f32 -0.5, %v1206_v10  ;;  %v306_v24 = vsel %vm1227_vm1, %v303_v43, %v300_v17  ;;  %v313_v22 = vand.u32 2147483647, %v1189_v21 }
  0xf0   :  { %v497_v35 = vmul.f32 %v1005_v51, %v449_v7  ;;  %v372_v44 = vmul.f32 0.6931472, %v736_v2  ;;  %v1240_v0 = vpop.eup %737  ;;  %v410_v16 = vadd.f32 %v306_v24, %v154_v31  ;;  %vm377_vm2 = vcmp.lt.f32.partialorder %v376_v3, 0.0004427343 }
  0xf1   :  { %741 = vlog2.f32 %v379_v40  ;;  %v383_v37 = vadd.f32 1.0, %v382_v32  ;;  %vm178_vm3 = vcmp.ne.f32.partialorder %v1094_v53, %v1094_v53  ;;  %v514_v9 = vsub.f32 1.0, %v866_v25 }
  0xf2   :  { %743 = vpow2.f32 %v260_v36  ;;  %v529_v50 = vadd.f32 %v513_v58, %v497_v35  ;;  %v378_v51 = vsel %vm377_vm2, %v375_v19, %v372_v44  ;;  %v426_v39 = vsel %vm170_vm0, %v1067_v49, %v410_v16 }
  0xf3   :  { %v418_v42 = vadd.f32 %v378_v51, %v162_v13  ;;  %v312_v31 = vmul.f32 %v1189_v21, %v311_v47  ;;  %v442_v45 = vsub.f32 0.0, %v426_v39  ;;  %vm1254_vm4 = vcmp.lt.f32.partialorder %v313_v22, 0.0004427343 }
  0xf4   :  { %v740_v6 = vpop.eup %739  ;;  %599 = vmatmul.f32.gmra.mxu3 %v529_v50  ;;  %v316_v29 = vadd.f32 1.0, %v1210_v33  ;;  %v319_v58 = vmul.f32 -0.5, %v1210_v33  ;;  %v384_v13 = vmul.f32 %v1206_v10, %v383_v37  ;;  %v385_v25 = vand.u32 2147483647, %v1206_v10 }
  0xf5   :  { %v434_v49 = vsel %vm178_vm3, %v1094_v53, %v418_v42  ;;  %v309_v18 = vmul.f32 0.6931472, %v740_v6  ;;  %v490_v21 = vmul.f32 %v1007_v52, %v442_v45  ;;  %v322_v14 = vand.u32 2147483647, %v1210_v33 }
  0xf6   :  { %v450_v60 = vsub.f32 0.0, %v434_v49  ;;  %745 = vlog2.f32 %v316_v29  ;;  %v320_v48 = vadd.f32 1.0, %v319_v58  ;;  %v388_v46 = vadd.f32 1.0, %v1218_v63 }
  0xf7   :  { %v742_v43 = vpop.eup %741  ;;  %v315_v5 = vsel %vm1254_vm4, %v312_v31, %v309_v18  ;;  %v391_v53 = vmul.f32 -0.5, %v1218_v63  ;;  %v522_v34 = vadd.f32 %v506_v11, %v490_v21  ;;  %v164_v36 = vmax.f32 %v1155_v61, 0.0 }
  0xf8   :  { %v1269_v23 = vpop.eup %743  ;;  %v498_v10 = vmul.f32 %v1010_v55, %v450_v60  ;;  %v411_v52 = vadd.f32 %v315_v5, %v155_v20  ;;  %v381_v3 = vmul.f32 0.6931472, %v742_v43  ;;  %vm171_vm5 = vcmp.ne.f32.partialorder %v1096_v12, %v1096_v12  ;;  %v1420_v5 = vld [vmem:[#allocation6_spill] sm:$0xff] }
  0xf9   :  { %vm386_vm6 = vcmp.lt.f32.partialorder %v385_v25, 0.0004427343  ;;  %747 = vlog2.f32 %v388_v46  ;;  %578 = vmatmul.f32.gmra.mxu1 %v522_v34  ;;  %v392_v19 = vadd.f32 1.0, %v391_v53  ;;  %v507_v55 = vsub.f32 1.0, %v873_v26 }
  0xfa   :  { %v530_v7 = vadd.f32 %v514_v9, %v498_v10  ;;  %v427_v17 = vsel %vm171_vm5, %v1096_v12, %v411_v52  ;;  %v387_v2 = vsel %vm386_vm6, %v384_v13, %v381_v3  ;;  %v321_v47 = vmul.f32 %v1210_v33, %v320_v48 }
  0xfb   :  { %v443_v11 = vsub.f32 0.0, %v427_v17  ;;  %v419_v20 = vadd.f32 %v387_v2, %v163_v38  ;;  %vm179_vm7 = vcmp.ne.f32.partialorder %v1119_v54, %v1119_v54  ;;  %vm1284_vm8 = vcmp.lt.f32.partialorder %v322_v14, 0.0004427343 }
  0xfc   :  { %v746_v40 = vpop.eup %745  ;;  %602 = vmatmul.f32.gmra.mxu3 %v530_v7  ;;  %v325_v12 = vadd.f32 1.0, %v1240_v0  ;;  %v328_v35 = vmul.f32 -0.5, %v1240_v0  ;;  %v394_v33 = vand.u32 2147483647, %v1218_v63  ;;  %v515_v22 = vsub.f32 1.0, %v878_v27 }
  0xfd   :  { %v491_v26 = vmul.f32 %v1012_v56, %v443_v11  ;;  %v435_v24 = vsel %vm179_vm7, %v1119_v54, %v419_v20  ;;  %v318_v38 = vmul.f32 0.6931472, %v746_v40  ;;  %v393_v16 = vmul.f32 %v1218_v63, %v392_v19 }
  0xfe   :  { %v451_v44 = vsub.f32 0.0, %v435_v24  ;;  %749 = vlog2.f32 %v325_v12  ;;  %v329_v39 = vadd.f32 1.0, %v328_v35  ;;  %v397_v42 = vadd.f32 1.0, %v1269_v23 }
  0xff   :  { %v748_v37 = vpop.eup %747  ;;  %v523_v50 = vadd.f32 %v507_v55, %v491_v26  ;;  %v324_v51 = vsel %vm1284_vm8, %v321_v47, %v318_v38  ;;  %v331_v31 = vand.u32 2147483647, %v1240_v0  ;;  %vm172_vm9 = vcmp.ne.f32.partialorder %v1131_v1, %v1131_v1 }
 0x100   :  { %v499_v56 = vmul.f32 %v1014_v57, %v451_v44  ;;  %v412_v54 = vadd.f32 %v324_v51, %v156_v59  ;;  %v390_v9 = vmul.f32 0.6931472, %v748_v37  ;;  %vm395_vm10 = vcmp.lt.f32.partialorder %v394_v33, 0.0004427343 }
 0x101   :  { %751 = vlog2.f32 %v397_v42  ;;  %v400_v27 = vmul.f32 -0.5, %v1269_v23  ;;  %v651_v63 = vadd.f32 -1.0, %v1020_v8  ;;  %581 = vmatmul.f32.gmra.mxu1 %v523_v50  ;;  %v508_v59 = vsub.f32 1.0, %v885_v28 }
 0x102   :  { %v531_v6 = vadd.f32 %v515_v22, %v499_v56  ;;  %v428_v45 = vsel %vm172_vm9, %v1131_v1, %v412_v54  ;;  %v396_v57 = vsel %vm395_vm10, %v393_v16, %v390_v9  ;;  %v330_v58 = vmul.f32 %v1240_v0, %v329_v39  ;;  %v1419_v0 = vld [vmem:[#allocation5_spill] sm:$0xff] }
 0x103   :  { %v444_v41 = vsub.f32 0.0, %v428_v45  ;;  %v420_v29 = vadd.f32 %v396_v57, %v164_v36  ;;  %v461_v18 = vmul.f32 2.0, %v897_v30  ;;  %vm180_vm11 = vcmp.ne.f32.partialorder %v1155_v61, %v1155_v61 }
 0x104   :  { %v750_v49 = vpop.eup %749  ;;  %605 = vmatmul.f32.gmra.mxu3 %v531_v6  ;;  %vm332_vm12 = vcmp.lt.f32.partialorder %v331_v31, 0.0004427343  ;;  %v401_v8 = vadd.f32 1.0, %v400_v27  ;;  %v403_v21 = vand.u32 2147483647, %v1269_v23  ;;  %v157_v28 = vmax.f32 %v1161_v15, 0.0 }
 0x105   :  { %v492_v13 = vmul.f32 %v1017_v4, %v444_v41  ;;  %v436_v1 = vsel %vm180_vm11, %v1155_v61, %v420_v29  ;;  %v327_v25 = vmul.f32 0.6931472, %v750_v49  ;;  %v516_v14 = vsub.f32 1.0, %v1419_v0 }
 0x106   :  { %v452_v60 = vsub.f32 0.0, %v436_v1  ;;  %v469_v48 = vmul.f32 2.0, %v1420_v5  ;;  %v402_v4 = vmul.f32 %v1269_v23, %v401_v8  ;;  %v644_v3 = vadd.f32 -1.0, %v461_v18 }
 0x107   :  { %v752_v43 = vpop.eup %751  ;;  %v524_v46 = vadd.f32 %v508_v59, %v492_v13  ;;  %v333_v53 = vsel %vm332_vm12, %v330_v58, %v327_v25  ;;  %v165_v61 = vmax.f32 %v1182_v62, 0.0  ;;  %vm173_vm13 = vcmp.ne.f32.partialorder %v1161_v15, %v1161_v15 }
 0x108   :  { %v500_v34 = vmul.f32 %v651_v63, %v452_v60  ;;  %v413_v10 = vadd.f32 %v333_v53, %v157_v28  ;;  %v399_v52 = vmul.f32 0.6931472, %v752_v43  ;;  %vm404_vm14 = vcmp.lt.f32.partialorder %v403_v21, 0.0004427343 }
 0x109   :  { %584 = vmatmul.f32.gmra.mxu1 %v524_v46  ;;  %v509_v19 = vsub.f32 1.0, %v897_v30  ;;  %v652_v55 = vadd.f32 -1.0, %v469_v48  ;;  %vm181_vm15 = vcmp.ne.f32.partialorder %v1182_v62, %v1182_v62  ;;  %v517_v40 = vsub.f32 1.0, %v1420_v5 }
 0x10a   :  { %v532_v36 = vadd.f32 %v516_v14, %v500_v34  ;;  %v429_v7 = vsel %vm173_vm13, %v1161_v15, %v413_v10  ;;  %v405_v17 = vsel %vm404_vm14, %v402_v4, %v399_v52  ;;  %vm615_vm0 = vcmask 7168  }
 0x10b   :  { %v445_v2 = vsub.f32 0.0, %v429_v7  ;;  %v421_v11 = vadd.f32 %v405_v17, %v165_v61 }
 0x10c   :  { %608 = vmatmul.f32.gmra.mxu3 %v532_v36 }
 0x10d   :  { %v493_v23 = vmul.f32 %v644_v3, %v445_v2  ;;  %v437_v20 = vsel %vm181_vm15, %v1182_v62, %v421_v11 }
 0x10e   :  { %v453_v47 = vsub.f32 0.0, %v437_v20 }
 0x10f   :  { %v525_v32 = vadd.f32 %v509_v19, %v493_v23 }
 0x110   :  { %v501_v12 = vmul.f32 %v652_v55, %v453_v47 }
 0x111   :  { %587 = vmatmul.f32.gmra.mxu1 %v525_v32 }
 0x112   :  { %v533_v15 = vadd.f32 %v517_v40, %v501_v12 }
 0x114   :  { %611 = vmatmul.f32.gmra.mxu3 %v533_v15 }
 0x147   :  { %v567_v35 = vpop.f32.mrf.mxu1 }
 0x148   :  { %616 = vst.msk [vmem:[%s1396_s4] sm:$0xff] %vm615_vm0, %v567_v35 }
 0x150   :  { %v570_v30 = vpop.f32.mrf.mxu1 }
 0x151   :  { %617 = vst.msk [vmem:[%s1396_s4 + $0x8] sm:$0xff] %vm615_vm0, %v570_v30 }
 0x152   :  { %v591_v62 = vpop.f32.mrf.mxu3 }
 0x153   :  { %624 = vst.msk [vmem:[%s1396_s4 + $0x40] sm:$0xff] %vm615_vm0, %v591_v62 }
 0x15c   :  { %v594_v26 = vpop.f32.mrf.mxu3  ;;  %v573_v24 = vpop.f32.mrf.mxu1 }
 0x15d   :  { %625 = vst.msk [vmem:[%s1396_s4 + $0x48] sm:$0xff] %vm615_vm0, %v594_v26 }
 0x15e   :  { %618 = vst.msk [vmem:[%s1396_s4 + $0x10] sm:$0xff] %vm615_vm0, %v573_v24 }
 0x16a   :  { %v597_v38 = vpop.f32.mrf.mxu3 }
 0x16b   :  { %v576_v33 = vpop.f32.mrf.mxu1  ;;  %626 = vst.msk [vmem:[%s1396_s4 + $0x50] sm:$0xff] %vm615_vm0, %v597_v38 }
 0x16c   :  { %619 = vst.msk [vmem:[%s1396_s4 + $0x18] sm:$0xff] %vm615_vm0, %v576_v33 }
 0x176   :  { %v579_v44 = vpop.f32.mrf.mxu1 }
 0x177   :  { %v600_v22 = vpop.f32.mrf.mxu3  ;;  %620 = vst.msk [vmem:[%s1396_s4 + $0x20] sm:$0xff] %vm615_vm0, %v579_v44 }
 0x178   :  { %627 = vst.msk [vmem:[%s1396_s4 + $0x58] sm:$0xff] %vm615_vm0, %v600_v22 }
 0x17e   :  { %v582_v16 = vpop.f32.mrf.mxu1 }
 0x17f   :  { %v603_v37 = vpop.f32.mrf.mxu3  ;;  %621 = vst.msk [vmem:[%s1396_s4 + $0x28] sm:$0xff] %vm615_vm0, %v582_v16 }
 0x180   :  { %628 = vst.msk [vmem:[%s1396_s4 + $0x60] sm:$0xff] %vm615_vm0, %v603_v37 }
 0x186   :  { %v585_v50 = vpop.f32.mrf.mxu1 }
 0x187   :  { %v606_v51 = vpop.f32.mrf.mxu3  ;;  %622 = vst.msk [vmem:[%s1396_s4 + $0x30] sm:$0xff] %vm615_vm0, %v585_v50 }
 0x188   :  { %629 = vst.msk [vmem:[%s1396_s4 + $0x68] sm:$0xff] %vm615_vm0, %v606_v51 }
 0x18e   :  { %v588_v39 = vpop.f32.mrf.mxu1 }
 0x18f   :  { %v609_v42 = vpop.f32.mrf.mxu3  ;;  %623 = vst.msk [vmem:[%s1396_s4 + $0x38] sm:$0xff] %vm615_vm0, %v588_v39 }
 0x190   :  { %630 = vst.msk [vmem:[%s1396_s4 + $0x70] sm:$0xff] %vm615_vm0, %v609_v42 }
 0x197   :  { %v612_v56 = vpop.f32.mrf.mxu3 }
 0x198   :  { %631 = vst.msk [vmem:[%s1396_s4 + $0x78] sm:$0xff] %vm615_vm0, %v612_v56 }
 0x199   :  { %636 = vsyncpa [#allocation3], 1 }

</bundles_post_ra>
